<compile_context>
chip_gen: v5e
topology: v5e:2x2
jax: 0.10.0
libtpu: 0.0.40
codegen_flags: <defaults>
</compile_context>

<pallas_src>
import functools

import jax
import jax.numpy as jnp
from jax.experimental import pallas as pl
from jax.experimental.pallas import tpu as pltpu

GAMMA = 1.5
ALPHA = 0.25
LANES = 128
MAX_TILE_ROWS = 2048   # (2048,128) f32 block = 1 MiB; 2 inputs x 2 bufs = 4 MiB VMEM
NUM_CORES = 2          # leading "parallel" axis -> both TensorCores on v7x


def _focal_loss_kernel(pred_ref, true_ref, out_ref, *, gamma, alpha):
    s = pl.program_id(1)

    @pl.when(s == 0)
    def _():
        out_ref[...] = jnp.zeros_like(out_ref)

    x = pred_ref[...].astype(jnp.float32)
    y = true_ref[...].astype(jnp.float32)

    # Single EUP exp, reused for BCE and sigmoid.
    e = jnp.exp(-jnp.abs(x))

    # BCEWithLogitsLoss(reduction='none'), numerically stable form.
    bce = jnp.maximum(x, 0.0) - x * y + jnp.log1p(e)

    # sigmoid from the same e: inv = 1/(1+e) via approx EUP reciprocal plus one
    # Newton step on the VPU (restores ~f32 accuracy without a full divide).
    d = 1.0 + e
    inv = pl.reciprocal(d, approx=True)
    inv = inv * (2.0 - d * inv)
    p = jnp.where(x >= 0.0, inv, e * inv)            # sigmoid(x)
    one_minus_p = jnp.where(x >= 0.0, e * inv, inv)  # 1 - sigmoid(x), no cancellation

    # m = 1 - p_t  with  p_t = y*p + (1-y)*(1-p)
    m = y * one_minus_p + (1.0 - y) * p
    alpha_factor = y * alpha + (1.0 - y) * (1.0 - alpha)

    # (1 - p_t)**gamma; for gamma == 1.5 use m*sqrt(m) (avoids pow = exp+log).
    if gamma == 1.5:
        mod = m * jnp.sqrt(m)
    else:
        mod = m ** gamma

    loss = bce * alpha_factor * mod

    # VPU-only accumulation: fold the tile rows onto the resident (8,128)
    # output block; the one cross-lane/sublane reduce happens outside the kernel.
    tr = loss.shape[0]
    out_ref[...] += jnp.sum(loss.reshape(tr // 8, 8, LANES), axis=0)


def focal_loss(pred, true, gamma=GAMMA, alpha=ALPHA):
    assert pred.shape == true.shape
    n_total = int(pred.size)

    rows = -(-n_total // LANES)                               # ceil
    tile_rows = min(MAX_TILE_ROWS, ((rows + 7) // 8) * 8)     # sublane-aligned
    n_tiles = -(-rows // tile_rows)
    n_tiles = -(-n_tiles // NUM_CORES) * NUM_CORES            # even core split
    rows_padded = n_tiles * tile_rows
    steps_per_core = n_tiles // NUM_CORES
    n_padded = rows_padded * LANES

    # Pad with (pred=+100, true=1): that element's focal loss is exactly 0,
    # so padding never perturbs the sum; divide by the real n_total below.
    pred_flat = pred.reshape(-1)
    true_flat = true.reshape(-1)
    pad = n_padded - n_total
    if pad:
        pred_flat = jnp.concatenate(
            [pred_flat, jnp.full((pad,), 100.0, pred_flat.dtype)])
        true_flat = jnp.concatenate(
            [true_flat, jnp.ones((pad,), true_flat.dtype)])
    pred2d = pred_flat.reshape(rows_padded, LANES)
    true2d = true_flat.reshape(rows_padded, LANES)

    kernel = functools.partial(_focal_loss_kernel, gamma=gamma, alpha=alpha)
    in_map = lambda c, s: (c * steps_per_core + s, 0)

    partials = pl.pallas_call(
        kernel,
        out_shape=jax.ShapeDtypeStruct((NUM_CORES * 8, LANES), jnp.float32),
        grid_spec=pltpu.PrefetchScalarGridSpec(
            num_scalar_prefetch=0,
            grid=(NUM_CORES, steps_per_core),
            in_specs=[
                pl.BlockSpec((tile_rows, LANES), in_map),
                pl.BlockSpec((tile_rows, LANES), in_map),
            ],
            out_specs=pl.BlockSpec((8, LANES), lambda c, s: (c, 0)),
        ),
        compiler_params=pltpu.CompilerParams(
            dimension_semantics=("parallel", "arbitrary")),
    )(pred2d, true2d)

    # reduction == 'mean' (original reduction of the wrapped BCEWithLogitsLoss)
    return jnp.sum(partials) / n_total


def focal_loss_ref(pred, true, gamma=GAMMA, alpha=ALPHA):
    """Pure-JAX reference matching the PyTorch module."""
    x = pred.astype(jnp.float32)
    y = true.astype(jnp.float32)
    bce = jnp.maximum(x, 0.0) - x * y + jnp.log1p(jnp.exp(-jnp.abs(x)))
    p = jax.nn.sigmoid(x)
    p_t = y * p + (1.0 - y) * (1.0 - p)
    alpha_factor = y * alpha + (1.0 - y) * (1.0 - alpha)
    modulating_factor = (1.0 - p_t) ** gamma
    return jnp.mean(bce * alpha_factor * modulating_factor)


if __name__ == "__main__":
    key = jax.random.PRNGKey(0)
    k1, k2 = jax.random.split(key)

    # NCHW-style logits and binary targets, e.g. (batch=2, channels=4, 16, 16).
    pred = jax.random.normal(k1, (2, 4, 16, 16), dtype=jnp.float32)
    true = (jax.random.uniform(k2, (2, 4, 16, 16)) > 0.5).astype(jnp.float32)

    out = focal_loss(pred, true)
    jax.block_until_ready(out)

    ref = focal_loss_ref(pred, true)
    assert jnp.allclose(out, ref, rtol=1e-4, atol=1e-6), (out, ref)

    print("KERNEL_OK")
</pallas_src>

<mosaic_0001>
module attributes {stable_mosaic.version = 11 : i64} {
  func.func @_focal_loss_kernel(%arg0: i32, %arg1: i32, %arg2: memref<16x128xf32, #tpu.memory_space<vmem>>, %arg3: memref<16x128xf32, #tpu.memory_space<vmem>>, %arg4: memref<8x128xf32, #tpu.memory_space<vmem>>) attributes {dimension_semantics = [#tpu.dimension_semantics<parallel>, #tpu.dimension_semantics<arbitrary>], iteration_bounds = array<i64: 2, 1>, scalar_prefetch = 0 : i64, scratch_operands = 0 : i64, tpu.core_type = #tpu.core_type<tc>, window_params = [{transform_indices = @transform_0, window_bounds = array<i64: 16, 128>}, {transform_indices = @transform_1, window_bounds = array<i64: 16, 128>}, {transform_indices = @transform_2, window_bounds = array<i64: 8, 128>}]} {
    %c0_i32 = arith.constant 0 : i32
    %0 = arith.cmpi eq, %arg1, %c0_i32 : i32
    %1 = arith.extui %0 : i1 to i32
    %c0_i32_0 = arith.constant 0 : i32
    %2 = arith.cmpi ne, %1, %c0_i32_0 : i32
    scf.if %2 {
      %cst_18 = arith.constant 0.000000e+00 : f32
      %51 = vector.broadcast %cst_18 : f32 to vector<8x128xf32>
      %c0_19 = arith.constant 0 : index
      %c0_20 = arith.constant 0 : index
      %52 = vector.load %arg4[%c0_19, %c0_20] : memref<8x128xf32, #tpu.memory_space<vmem>>, vector<8x128xf32>
      tpu.vector_store %arg4[%c0_19, %c0_20], %51 {strides = array<i32>} : memref<8x128xf32, #tpu.memory_space<vmem>>, vector<8x128xf32>,
    } else {
    }
    %c0 = arith.constant 0 : index
    %c0_1 = arith.constant 0 : index
    %3 = vector.load %arg2[%c0, %c0_1] : memref<16x128xf32, #tpu.memory_space<vmem>>, vector<16x128xf32>
    %c0_2 = arith.constant 0 : index
    %c0_3 = arith.constant 0 : index
    %4 = vector.load %arg3[%c0_2, %c0_3] : memref<16x128xf32, #tpu.memory_space<vmem>>, vector<16x128xf32>
    %5 = math.absf %3 : vector<16x128xf32>
    %cst = arith.constant 0.000000e+00 : f32
    %6 = vector.broadcast %cst : f32 to vector<16x128xf32>
    %7 = arith.subf %6, %5 : vector<16x128xf32>
    %8 = math.exp %7 : vector<16x128xf32>
    %cst_4 = arith.constant 0.000000e+00 : f32
    %9 = vector.broadcast %cst_4 : f32 to vector<16x128xf32>
    %10 = arith.maximumf %3, %9 : vector<16x128xf32>
    %11 = arith.mulf %3, %4 : vector<16x128xf32>
    %12 = arith.subf %10, %11 : vector<16x128xf32>
    %13 = math.log1p %8 : vector<16x128xf32>
    %14 = arith.addf %12, %13 : vector<16x128xf32>
    %cst_5 = arith.constant 1.000000e+00 : f32
    %15 = vector.broadcast %cst_5 : f32 to vector<16x128xf32>
    %16 = arith.addf %15, %8 : vector<16x128xf32>
    %17 = tpu.reciprocal %16 {approx = true} : vector<16x128xf32> -> vector<16x128xf32>
    %18 = arith.mulf %16, %17 : vector<16x128xf32>
    %cst_6 = arith.constant 2.000000e+00 : f32
    %19 = vector.broadcast %cst_6 : f32 to vector<16x128xf32>
    %20 = arith.subf %19, %18 : vector<16x128xf32>
    %21 = arith.mulf %17, %20 : vector<16x128xf32>
    %cst_7 = arith.constant 0.000000e+00 : f32
    %22 = vector.broadcast %cst_7 : f32 to vector<16x128xf32>
    %23 = arith.cmpf oge, %3, %22 : vector<16x128xf32>
    %24 = arith.mulf %8, %21 : vector<16x128xf32>
    %25 = arith.select %23, %21, %24 : vector<16x128xi1>, vector<16x128xf32>
    %cst_8 = arith.constant 0.000000e+00 : f32
    %26 = vector.broadcast %cst_8 : f32 to vector<16x128xf32>
    %27 = arith.cmpf oge, %3, %26 : vector<16x128xf32>
    %28 = arith.mulf %8, %21 : vector<16x128xf32>
    %29 = arith.select %27, %28, %21 : vector<16x128xi1>, vector<16x128xf32>
    %30 = arith.mulf %4, %29 : vector<16x128xf32>
    %cst_9 = arith.constant 1.000000e+00 : f32
    %31 = vector.broadcast %cst_9 : f32 to vector<16x128xf32>
    %32 = arith.subf %31, %4 : vector<16x128xf32>
    %33 = arith.mulf %32, %25 : vector<16x128xf32>
    %34 = arith.addf %30, %33 : vector<16x128xf32>
    %cst_10 = arith.constant 2.500000e-01 : f32
    %35 = vector.broadcast %cst_10 : f32 to vector<16x128xf32>
    %36 = arith.mulf %4, %35 : vector<16x128xf32>
    %cst_11 = arith.constant 1.000000e+00 : f32
    %37 = vector.broadcast %cst_11 : f32 to vector<16x128xf32>
    %38 = arith.subf %37, %4 : vector<16x128xf32>
    %cst_12 = arith.constant 7.500000e-01 : f32
    %39 = vector.broadcast %cst_12 : f32 to vector<16x128xf32>
    %40 = arith.mulf %38, %39 : vector<16x128xf32>
    %41 = arith.addf %36, %40 : vector<16x128xf32>
    %42 = math.sqrt %34 : vector<16x128xf32>
    %43 = arith.mulf %34, %42 : vector<16x128xf32>
    %44 = arith.mulf %14, %41 : vector<16x128xf32>
    %45 = arith.mulf %44, %43 : vector<16x128xf32>
    %c0_13 = arith.constant 0 : index
    %c0_14 = arith.constant 0 : index
    %46 = vector.load %arg4[%c0_13, %c0_14] : memref<8x128xf32, #tpu.memory_space<vmem>>, vector<8x128xf32>
    %47 = vector.shape_cast %45 : vector<16x128xf32> to vector<2x8x128xf32>
    %cst_15 = arith.constant dense<0.000000e+00> : vector<8x128xf32>
    %48 = vector.multi_reduction <add>, %47, %cst_15 [0] : vector<2x8x128xf32> to vector<8x128xf32>
    %49 = arith.addf %46, %48 : vector<8x128xf32>
    %c0_16 = arith.constant 0 : index
    %c0_17 = arith.constant 0 : index
    %50 = vector.load %arg4[%c0_16, %c0_17] : memref<8x128xf32, #tpu.memory_space<vmem>>, vector<8x128xf32>
    tpu.vector_store %arg4[%c0_16, %c0_17], %49 {strides = array<i32>} : memref<8x128xf32, #tpu.memory_space<vmem>>, vector<8x128xf32>,
    return
  }
  func.func @transform_0(%arg0: i32, %arg1: i32) -> (i32, i32) {
    %c1_i32 = arith.constant 1 : i32
    %0 = arith.muli %arg0, %c1_i32 : i32
    %1 = arith.addi %0, %arg1 : i32
    %c0_i32 = arith.constant 0 : i32
    %c0_i32_0 = arith.constant 0 : i32
    return %1, %c0_i32 : i32, i32
  }
  func.func @transform_1(%arg0: i32, %arg1: i32) -> (i32, i32) {
    %c1_i32 = arith.constant 1 : i32
    %0 = arith.muli %arg0, %c1_i32 : i32
    %1 = arith.addi %0, %arg1 : i32
    %c0_i32 = arith.constant 0 : i32
    %c0_i32_0 = arith.constant 0 : i32
    return %1, %c0_i32 : i32, i32
  }
  func.func @transform_2(%arg0: i32, %arg1: i32) -> (i32, i32) {
    %c0_i32 = arith.constant 0 : i32
    %c0_i32_0 = arith.constant 0 : i32
    return %arg0, %c0_i32 : i32, i32
  }
}

</mosaic_0001>

<bundles_post_ra>
// kernel: tpu_custom_call.1
= control target key start
LH: loop header
LB: loop body
LE: loop exit
PB: predicated region body
PF: predicated region fallthrough
CT: control target
= control target key end

     0   :  { %7 = vsyncpa [#allocation3], 0  ;;  %s903_s0 = inlined_call_operand.hbm [shape: f32[32,128], index: 0, kind: input, shape index: {}]   ;;  %s904_s1 = inlined_call_operand.hbm [shape: f32[32,128], index: 1, kind: input, shape index: {}]   ;;  %s905_s2 = inlined_call_operand.hbm [shape: f32[16,128], index: 2, kind: output, shape index: {}]  }
   0x1   :  { %9 = vsyncpa [#allocation3 + $0x1], 0 }
   0x2   :  { %10 = vsyncpa [#allocation6], 0 }
   0x3   :  { %12 = vsyncpa [#allocation6 + $0x1], 0 }
   0x4   :  { %13 = vsyncpa [#allocation4], 0 }
   0x5   :  { %15 = vsyncpa [#allocation4 + $0x1], 0  ;;  %s727_s9 = smov 0   ;;  %s729_s10 = smov 0  }
   0x6   :  { %s731_s11 = smov 0   ;;  %s733_s12 = smov 0  }
   0x7   :  { %s735_s13 = smov 0   ;;  %s737_s14 = smov 0  }
   0x8 LB: > { %s456_s15 = sadd.s32 4294967295, %s708_s14   ;;  %s457_s16 = sadd.s32 4294967294, %s708_s14   ;;  %s708_s14 = sphi %s737_s14, %s21_s14   ;;  %s704_s13 = sphi %s735_s13, %s919_s13   ;;  %s700_s12 = sphi %s733_s12, %s918_s12   ;;  %s696_s11 = sphi %s731_s11, %s917_s11   ;;  %s692_s10 = sphi %s729_s10, %s916_s10   ;;  %s688_s9 = sphi %s727_s9, %s915_s9  }
   0x9   : > { %s33_s17 = sadd.s32 1, %s704_s13  ;;  %s42_s18 = sadd.s32 1, %s696_s11 }
   0xa   : > { %p35_p0 = scmp.ge.s32.totalorder %s33_s17, 2  ;;  %p49_p1 = scmp.ne.s32.totalorder %s696_s11, %s692_s10 }
   0xb   : > { %p50_p2 = scmp.eq.s32.totalorder %s708_s14, 0  ;;  %p55_p3 = scmp.ne.s32.totalorder %s692_s10, %s688_s9 }
   0xc   : > { %s921_s17 = smov (%p35_p0, %s33_s17), 0  ;;  %p56_p5 = scmp.eq.s32.totalorder %s456_s15, 0 }
   0xd   : > { %p768_p4 = por %p50_p2, %p49_p1  ;;  %s39_s20 = ssub.s32 %s704_s13, %s921_s17 }
   0xe   : > { %p107_p6 = scmp.eq.s32.totalorder %s456_s15, 1  ;;  %p40_p7 = scmp.eq.s32.totalorder %s39_s20, 0 }
   0xf   : > { %p774_p8 = por %p56_p5, %p55_p3  ;;  %p113_p10 = scmp.eq.s32.totalorder %s457_s16, 1 }
  0x10   : > { %p778_p9 = por %p107_p6, %p49_p1  ;;  %p459_p12 = scmp.ge.s32.totalorder %s708_s14, 2 }
  0x11   : > { %s783_s23 = scalar_select %p40_p7, %s696_s11, %s42_s18  }
  0x12   : > { %p785_p11 = por %p113_p10, %p55_p3  ;;  %p493_p13 = scmp.lt.s32.totalorder %s708_s14, 2 }
  0x13   : > { %s792_s25 = sand.u32 1, %s696_s11   ;;  %s474_s27 = sshll.u32 %s704_s13, 4 }
  0x14   : > { %s460_s26 = sshll.u32 %s792_s25, 4  ;;  %s143_s30 = scalar_lea.hbm %s903_s0, %s474_s27 }
  0x15   : > { %s137_s3 = scalar_lea.vmem [#allocation2], %s460_s26  ;;  %s144_s5 = sshll.u32 %s143_s30, 4  ;;  %s145_s5 = int_to_ptr.hbm [resolvable:$true] %s144_s5 }
  0x16   : > { %s146_s4 = sshll.u32 %s137_s3, 4  ;;  %p801_p0 = pnand %p493_p13, %p768_p4  ;;  %s147_s4 = int_to_ptr.vmem [resolvable:$true] %s146_s4 }
  0x17   : > { %p466_p1 = scmp.ge.s32.totalorder %s708_s14, 1  ;;  %s134_s7 = scalar_lea.sflag [#allocation3], %s792_s25 }
  0x18   : > { %s710_s8 = smov 128   ;;  %s711_s15 = smov 8  }
  0x19   : > { %485 = dma.hbm_to_vmem [thread:$0]  (!%p801_p0), %s145_s5, 256, %s147_s4, %s134_s7, %s710_s8, %s710_s8, %s711_s15  }
  0x1a   : > { %p177_p2 = scmp.lt.s32.totalorder %s708_s14, 3  ;;  %s166_s20 = scalar_lea.hbm %s904_s1, %s474_s27 }
  0x1b   : > { %s167_s28 = sshll.u32 %s166_s20, 4  ;;  %s160_s19 = scalar_lea.vmem [#allocation5], %s460_s26  ;;  %s168_s28 = int_to_ptr.hbm [resolvable:$true] %s167_s28 }
  0x1c   : > { %p178_p3 = pnand %p466_p1, %p177_p2  ;;  %s169_s29 = sshll.u32 %s160_s19, 4  ;;  %s170_s29 = int_to_ptr.vmem [resolvable:$true] %s169_s29 }
  0x1d   : > { %s157_s30 = scalar_lea.sflag [#allocation6], %s792_s25  ;;  %s817_s3 = sand.u32 (!%p178_p3), 1, %s692_s10  }
  0x1e   : > { %488 = dma.hbm_to_vmem [thread:$0]  (!%p801_p0), %s168_s28, 256, %s170_s29, %s157_s30, %s710_s8, %s710_s8, %s711_s15  }
  0x1f   : > { %181 = sbr.rel (%p178_p3) target bundleno = 106 (0x6a), region = 28  ;;  %s467_s4 = sshll.u32 (!%p178_p3), %s817_s3, 4 }
  0x20   : > { %s184_s5 = scalar_lea.sflag (!%p178_p3), [#allocation3], %s817_s3  ;;  %s187_s7 = scalar_lea.vmem (!%p178_p3), [#allocation2], %s467_s4 }
  0x24   : > { %675 = dma.done.wait (%p774_p8), %s184_s5, 256  }
  0x25   : > { %677 = vsyncadd (%p774_p8), %s184_s5, 4294967040  ;;  %s194_s25 = scalar_lea.sflag [#allocation6], %s817_s3  ;;  %s197_s26 = scalar_lea.vmem [#allocation5], %s467_s4 }
  0x26   : > { %679 = dma.done.wait (%p774_p8), %s194_s25, 256  }
  0x27   : > { %681 = vsyncadd (%p774_p8), %s194_s25, 4294967040  ;;  %v830_v0 = vld [vmem:[%s187_s7] sm:$0xff]  ;;  %v832_v1 = vld [vmem:[%s187_s7 + $0x8] sm:$0xff]  ;;  %s469_s21 = sshll.u32 %s817_s3, 3  ;;  %s471_s27 = sshll.u32 %s700_s12, 3 }
  0x28   : > { %v237_v2 = vand.u32 2147483647, %v830_v0  ;;  %v238_v3 = vand.u32 2147483647, %v832_v1  ;;  %v235_v16 = vld [vmem:[%s197_s26] sm:$0xff]  ;;  %v236_v18 = vld [vmem:[%s197_s26 + $0x8] sm:$0xff]  ;;  %s348_s15 = scalar_lea.hbm %s905_s2, %s471_s27 }
  0x29   : > { %vm281_vm0 = vcmp.ge.f32.partialorder %v830_v0, 0.0  ;;  %v291_v22 = vsub.f32 1.0, %v235_v16  ;;  %vm282_vm1 = vcmp.ge.f32.partialorder %v832_v1, 0.0  ;;  %v292_v24 = vsub.f32 1.0, %v236_v18  ;;  %s223_s16 = scalar_lea.vmem [#allocation7], %s469_s21  ;;  %s352_s20 = sshll.u32 %s348_s15, 4  ;;  %s353_s20 = int_to_ptr.hbm [resolvable:$true] %s352_s20 }
  0x2a   : > { %v239_v4 = vsub.f32 0.0, %v237_v2  ;;  %v240_v5 = vsub.f32 0.0, %v238_v3  ;;  %v245_v44 = vmax.f32 %v830_v0, 0.0  ;;  %v247_v45 = vmul.f32 %v235_v16, %v830_v0  ;;  %s350_s18 = sshll.u32 %s223_s16, 4  ;;  %s338_s12 = scalar_lea.sflag [#allocation4], %s817_s3  ;;  %s351_s18 = int_to_ptr.vmem [resolvable:$true] %s350_s18 }
  0x2b   : > { %v246_v48 = vmax.f32 %v832_v1, 0.0  ;;  %v248_v50 = vmul.f32 %v236_v18, %v832_v1  ;;  %v297_v60 = vmul.f32 0.25, %v235_v16  ;;  %v298_v62 = vmul.f32 0.25, %v236_v18  ;;  %s636_s28 = sshra.s32 %s353_s20, 4  ;;  %s642_s4 = scalar_lea.hbm %s905_s2, 16  ;;  %s637_s28 = int_to_ptr.hbm [resolvable:$true] %s636_s28 }
  0x2c   : > { %v241_v6 = vmul.f32 1.442695, %v239_v4  ;;  %v243_v7 = vmul.f32 1.442695, %v240_v5  ;;  %v249_v58 = vsub.f32 %v245_v44, %v247_v45  ;;  %v299_v63 = vmul.f32 0.75, %v291_v22  ;;  %s638_s19 = scalar_lea.hbm %s637_s28, 8  ;;  %p643_p7 = scmp.lt.s32.totalorder %s637_s28, %s905_s2 }
  0x2d   : > { %v300_v0 = vmul.f32 0.75, %v292_v24  ;;  %v250_v2 = vsub.f32 %v246_v48, %v248_v50  ;;  %p639_p4 = scmp.ne.s32.totalorder %s637_s28, %s638_s19  ;;  %p644_p8 = scmp.lt.s32.totalorder %s642_s4, %s638_s19 }
  0x2e   : > { %546 = vpow2.f32 %v241_v6 }
  0x2f   : > { %548 = vpow2.f32 %v243_v7  ;;  %p640_p5 = pnand %p639_p4, %p778_p9  ;;  %p645_p10 = por %p644_p8, %p643_p7 }
  0x31   : > { %p641_p6 = pneg %p640_p5 }
  0x33   : > { %p646_p13 = pnand %p645_p10, %p641_p6 }
  0x34   : > { %v547_v8 = vpop.eup %546 }
  0x35   : > { %v549_v9 = vpop.eup %548  ;;  %v251_v10 = vadd.f32 1.0, %v547_v8  ;;  %v254_v36 = vmul.f32 -0.5, %v547_v8  ;;  %v257_v41 = vand.u32 2147483647, %v547_v8 }
  0x36   : > { %v260_v11 = vadd.f32 1.0, %v549_v9  ;;  %v263_v37 = vmul.f32 -0.5, %v549_v9  ;;  %v266_v46 = vand.u32 2147483647, %v549_v9 }
  0x37   : > { %550 = vrcp.f32 %v251_v10  ;;  %v255_v39 = vadd.f32 1.0, %v254_v36  ;;  %vm846_vm2 = vcmp.lt.f32.partialorder %v257_v41, 0.0004427343 }
  0x38   : > { %552 = vrcp.f32 %v260_v11  ;;  %v264_v42 = vadd.f32 1.0, %v263_v37  ;;  %vm850_vm3 = vcmp.lt.f32.partialorder %v266_v46, 0.0004427343 }
  0x39   : > { %554 = vlog2.f32 %v251_v10  ;;  %v256_v52 = vmul.f32 %v547_v8, %v255_v39 }
  0x3a   : > { %556 = vlog2.f32 %v260_v11  ;;  %v265_v56 = vmul.f32 %v549_v9, %v264_v42 }
  0x3d   : > { %v551_v12 = vpop.eup %550 }
  0x3e   : > { %v553_v13 = vpop.eup %552  ;;  %v275_v14 = vmul.f32 %v551_v12, %v251_v10  ;;  %v302_v10 = vadd.f32 %v300_v0, %v298_v62 }
  0x3f   : > { %v276_v15 = vmul.f32 %v553_v13, %v260_v11  ;;  %v555_v38 = vpop.eup %554 }
  0x40   : > { %v277_v17 = vsub.f32 2.0, %v275_v14  ;;  %v557_v40 = vpop.eup %556  ;;  %v253_v51 = vmul.f32 0.6931472, %v555_v38 }
  0x41   : > { %v278_v19 = vsub.f32 2.0, %v276_v15  ;;  %v262_v55 = vmul.f32 0.6931472, %v557_v40 }
  0x42   : > { %v279_v20 = vmul.f32 %v551_v12, %v277_v17  ;;  %v259_v3 = vsel %vm846_vm2, %v256_v52, %v253_v51 }
  0x43   : > { %v280_v21 = vmul.f32 %v553_v13, %v278_v19  ;;  %v268_v5 = vsel %vm850_vm3, %v265_v56, %v262_v55 }
  0x44   : > { %v283_v23 = vmul.f32 %v547_v8, %v279_v20  ;;  %v269_v8 = vadd.f32 %v259_v3, %v249_v58  ;;  %v270_v12 = vadd.f32 %v268_v5, %v250_v2 }
  0x45   : > { %v284_v25 = vmul.f32 %v549_v9, %v280_v21  ;;  %v301_v9 = vadd.f32 %v299_v63, %v297_v60 }
  0x46   : > { %v285_v26 = vsel %vm281_vm0, %v279_v20, %v283_v23  ;;  %v287_v27 = vsel %vm281_vm0, %v283_v23, %v279_v20 }
  0x47   : > { %v286_v28 = vsel %vm282_vm1, %v280_v21, %v284_v25  ;;  %v288_v29 = vsel %vm282_vm1, %v284_v25, %v280_v21  ;;  %v289_v30 = vmul.f32 %v287_v27, %v235_v16  ;;  %v293_v31 = vmul.f32 %v291_v22, %v285_v26 }
  0x48   : > { %v290_v32 = vmul.f32 %v288_v29, %v236_v18  ;;  %v294_v33 = vmul.f32 %v292_v24, %v286_v28  ;;  %v329_v19 = vmul.f32 %v301_v9, %v269_v8  ;;  %v330_v22 = vmul.f32 %v302_v10, %v270_v12 }
  0x49   : > { %v838_v34 = vadd.f32 %v293_v31, %v289_v30 }
  0x4a   : > { %v296_v35 = vadd.f32 %v294_v33, %v290_v32 }
  0x4b   : > { %558 = vrsqrt.f32 %v838_v34  ;;  %vm310_vm4 = vcmp.eq.f32.partialorder %v838_v34, inf  ;;  %v313_v13 = vand.u32 2147483648, %v838_v34  ;;  %vm312_vm5 = vcmp.eq.f32.partialorder %v838_v34, 0.0 }
  0x4c   : > { %560 = vrsqrt.f32 %v296_v35  ;;  %vm322_vm6 = vcmp.eq.f32.partialorder %v296_v35, inf  ;;  %v325_v16 = vand.u32 2147483648, %v296_v35  ;;  %vm324_vm7 = vcmp.eq.f32.partialorder %v296_v35, 0.0 }
  0x51   : > { %v559_v43 = vpop.eup %558 }
  0x52   : > { %v561_v47 = vpop.eup %560  ;;  %v304_v49 = vmul.f32 %v559_v43, %v838_v34 }
  0x53   : > { %v316_v53 = vmul.f32 %v561_v47, %v296_v35 }
  0x54   : > { %v305_v57 = vmul.f32 %v559_v43, %v304_v49 }
  0x55   : > { %v317_v61 = vmul.f32 %v561_v47, %v316_v53 }
  0x56   : > { %v306_v1 = vmul.f32 0.5, %v305_v57 }
  0x57   : > { %v318_v4 = vmul.f32 0.5, %v317_v61 }
  0x58   : > { %v307_v6 = vsub.f32 1.5, %v306_v1 }
  0x59   : > { %v319_v7 = vsub.f32 1.5, %v318_v4 }
  0x5a   : > { %v308_v11 = vmul.f32 %v559_v43, %v307_v6 }
  0x5b   : > { %v320_v14 = vmul.f32 %v561_v47, %v319_v7 }
  0x5c   : > { %v309_v15 = vmul.f32 %v308_v11, %v838_v34 }
  0x5d   : > { %v321_v17 = vmul.f32 %v320_v14, %v296_v35 }
  0x5e   : > { %v311_v18 = vsel %vm310_vm4, %v838_v34, %v309_v15 }
  0x5f   : > { %v314_v20 = vsel %vm312_vm5, %v313_v13, %v311_v18  ;;  %v323_v21 = vsel %vm322_vm6, %v296_v35, %v321_v17 }
  0x60   : > { %v326_v23 = vsel %vm324_vm7, %v325_v16, %v323_v21  ;;  %v327_v24 = vmul.f32 %v314_v20, %v838_v34 }
  0x61   : > { %v328_v25 = vmul.f32 %v326_v23, %v296_v35 }
  0x62   : > { %v331_v26 = vmul.f32 %v329_v19, %v327_v24 }
  0x63   : > { %v332_v27 = vmul.f32 %v330_v22, %v328_v25 }
  0x65   : > { %v334_v28 = vadd.f32 %v332_v27, %v331_v26 }
  0x67   : > { %336 = vst [vmem:[%s223_s16] sm:$0xff] %v334_v28 }
  0x68   : > { %649 = shalt.err (!%p646_p13)
}
  0x69   : > { %480 = dma.vmem_to_hbm [thread:$0]  (%p778_p9), %s351_s18, 128, %s353_s20, %s338_s12  }
  0x6a PF: > { %s364_s3 = sand.u32 1, %s688_s9   ;;  %p490_p0 = pnand %p459_p12, %p785_p11 }
  0x6b   : > { %s365_s25 = scalar_lea.sflag [#allocation4], %s364_s3 }
  0x6c   : > { %p491_p1 = pneg %p490_p0 }
  0x6e   : > { %683 = dma.done.wait (%p491_p1), %s365_s25, 128  }
  0x6f   : > { %685 = vsyncadd (%p491_p1), %s365_s25, 4294967168  ;;  %s21_s14 = sadd.s32 1, %s708_s14   ;;  %s915_s9 = smov %s692_s10 }
  0x70   : > { %p18_p2 = scmp.ge.s32.totalorder %s21_s14, 4   ;;  %s916_s10 = smov %s696_s11 }
  0x71   : > { %s917_s11 = smov %s783_s23  ;;  %s918_s12 = smov %s704_s13 }
  0x72   : > { %s919_s13 = smov %s921_s17  ;;  %20 = sbr.rel (!%p18_p2) target bundleno = 8 (0x8), region = 90 }
  0x77   :  { %371 = vsyncpa [#allocation3], 1 }
  0x78   :  { %373 = vsyncpa [#allocation3 + $0x1], 1 }
  0x79   :  { %374 = vsyncpa [#allocation6], 1 }
  0x7a   :  { %376 = vsyncpa [#allocation6 + $0x1], 1 }
  0x7b   :  { %377 = vsyncpa [#allocation4], 1 }
  0x7c   :  { %379 = vsyncpa [#allocation4 + $0x1], 1 }

</bundles_post_ra>
